<compile_context>
chip_gen: v7x
topology: tpu7x:2x2x1
jax: 0.10.0
libtpu: 0.0.40
codegen_flags: <defaults>
</compile_context>

<pallas_src>
import jax
import jax.numpy as jnp
from jax.experimental import pallas as pl
from jax.experimental.pallas import tpu as pltpu

EPS = 1e-05

_TARGET_BLOCK_BYTES = 2 * 1024 * 1024  # ~2 MiB of input per block (review: 1-4 MiB)
_MIN_GRID_STEPS = 8                    # keep pipeline + both v7x TCs busy


def _layernorm_kernel(alpha_ref, beta_ref, x_ref, o_ref):
    # x_ref: (ROW_TILE, H) tile in VMEM; alpha/beta: scalar params in SMEM.
    x = x_ref[...].astype(jnp.float32)
    n = x.shape[-1]

    mean = jnp.mean(x, axis=-1, keepdims=True)
    diff = x - mean
    # torch.std is unbiased by default -> divide by (N - 1).
    # max(n-1, 1) guards the degenerate H == 1 case (torch would give NaN there;
    # pathological, intentionally not reproduced).
    var_unbiased = jnp.sum(diff * diff, axis=-1, keepdims=True) / jnp.float32(
        max(n - 1, 1)
    )

    # Fold alpha into the per-row scale (scalar-per-row multiply); rsqrt runs on
    # the EUP slot. Output is computed from x (not diff) so diff is dead after
    # the variance reduction -> fewer live full-width f32 temps.
    scale = alpha_ref[0] * jax.lax.rsqrt(var_unbiased + jnp.float32(EPS))
    shift = beta_ref[0] - mean * scale
    o_ref[...] = (x * scale + shift).astype(o_ref.dtype)


def _pick_row_tile(rows, H, in_dtype):
    """Byte-capped row tile that keeps the grid multi-step.

    Policy (per perf review):
      * ~2 MiB of input per block,
      * >= _MIN_GRID_STEPS grid steps when rows allow,
      * prefer an exact divisor of `rows` near the cap, but never below cap/2
        (ragged tail masked by Pallas beats pathologically small tiles).
    """
    in_bytes = jnp.dtype(in_dtype).itemsize
    row_bytes = max(H * in_bytes, 1)

    # Too few rows to tile legally (block rows must be a multiple of 8 unless
    # the block spans the full dim) -> single full block.
    if rows < 16:
        return rows

    cap = max(8, _TARGET_BLOCK_BYTES // row_bytes)
    # Force a multi-step grid even when everything would fit in one block, so
    # v7x's two TensorCores both get work and the DMA pipeline overlaps.
    cap = min(cap, max(8, rows // _MIN_GRID_STEPS))
    cap = max(8, (cap // 8) * 8)

    # Look for a divisor of rows in [cap/2, cap] -> no ragged tail.
    floor = max(((cap // 2) // 8) * 8, 8)
    for cand in range(cap, floor - 1, -8):
        if rows % cand == 0:
            return cand

    # Ragged fallback: Pallas masks the final partial block. Safe: LayerNorm is
    # strictly row-local, padded garbage rows never contaminate valid rows.
    return cap


def layer_normalization(x, alpha, beta, *, row_tile=None):
    """x: (batch, seq, hidden) float array. alpha, beta: shape (1,) params."""
    B, S, H = x.shape
    rows = B * S
    x2d = x.reshape(rows, H)

    if row_tile is None:
        row_tile = _pick_row_tile(rows, H, x.dtype)
    row_tile = min(row_tile, rows)

    grid = (pl.cdiv(rows, row_tile),)

    # Scalar params live in SMEM; keep them f32 regardless of input dtype.
    alpha = alpha.astype(jnp.float32)
    beta = beta.astype(jnp.float32)

    out2d = pl.pallas_call(
        _layernorm_kernel,
        out_shape=jax.ShapeDtypeStruct((rows, H), x.dtype),
        grid_spec=pltpu.PrefetchScalarGridSpec(
            num_scalar_prefetch=0,
            grid=grid,
            in_specs=[
                pl.BlockSpec(memory_space=pltpu.MemorySpace.SMEM),  # alpha
                pl.BlockSpec(memory_space=pltpu.MemorySpace.SMEM),  # beta
                # Note: default double-buffering is enough here; if xprof on
                # v5e ever shows exposed input DMA, pipeline_mode=pl.Buffered(3)
                # on this spec is the cheap knob to try.
                pl.BlockSpec((row_tile, H), lambda i: (i, 0)),      # x tile
            ],
            out_specs=pl.BlockSpec((row_tile, H), lambda i: (i, 0)),
        ),
        compiler_params=pltpu.CompilerParams(
            # Row-parallel grid shards across v7x's 2 TensorCores.
            # No vmem_limit override: ~2 MiB tiles fit the scoped default on
            # all generations.
            dimension_semantics=("parallel",),
        ),
    )(alpha, beta, x2d)

    return out2d.reshape(B, S, H)


def layer_normalization_ref(x, alpha, beta):
    mean = jnp.mean(x, axis=-1, keepdims=True)
    std = jnp.std(x, axis=-1, keepdims=True, ddof=1)  # unbiased, like torch.std
    return alpha * (x - mean) / jnp.sqrt(std ** 2 + EPS) + beta


if __name__ == "__main__":
    key = jax.random.PRNGKey(0)
    B, S, H = 2, 8, 32
    x = jax.random.normal(key, (B, S, H), dtype=jnp.float32)

    # Deterministic parameter init, matching nn.Parameter(torch.ones(1)/zeros(1))
    alpha = jnp.ones((1,), dtype=jnp.float32)
    beta = jnp.zeros((1,), dtype=jnp.float32)

    out = layer_normalization(x, alpha, beta)
    out = jax.block_until_ready(out)

    ref = layer_normalization_ref(x, alpha, beta)
    assert out.shape == (B, S, H)
    assert jnp.allclose(out, ref, atol=1e-5, rtol=1e-5)

    print("KERNEL_OK")
</pallas_src>

<mosaic_0001>
module attributes {stable_mosaic.version = 11 : i64} {
  func.func @_layernorm_kernel(%arg0: i32, %arg1: memref<1xf32, #tpu.memory_space<smem>>, %arg2: memref<1xf32, #tpu.memory_space<smem>>, %arg3: memref<8x32xf32, #tpu.memory_space<vmem>>, %arg4: memref<8x32xf32, #tpu.memory_space<vmem>>) attributes {dimension_semantics = [#tpu.dimension_semantics<parallel>], iteration_bounds = array<i64: 2>, scalar_prefetch = 0 : i64, scratch_operands = 0 : i64, tpu.core_type = #tpu.core_type<tc>, window_params = [{transform_indices = @transform_0, window_bounds = array<i64: 1>}, {transform_indices = @transform_1, window_bounds = array<i64: 1>}, {transform_indices = @transform_2, window_bounds = array<i64: 8, 32>}, {transform_indices = @transform_3, window_bounds = array<i64: 8, 32>}]} {
    %c0 = arith.constant 0 : index
    %c0_0 = arith.constant 0 : index
    %0 = vector.load %arg3[%c0, %c0_0] : memref<8x32xf32, #tpu.memory_space<vmem>>, vector<8x32xf32>
    %cst = arith.constant dense<0.000000e+00> : vector<8xf32>
    %1 = vector.multi_reduction <add>, %0, %cst [1] : vector<8x32xf32> to vector<8xf32>
    %2 = vector.shape_cast %1 : vector<8xf32> to vector<8x1xf32>
    %cst_1 = arith.constant 3.200000e+01 : f32
    %3 = vector.broadcast %cst_1 : f32 to vector<8x1xf32>
    %4 = arith.divf %2, %3 : vector<8x1xf32>
    %5 = vector.broadcast %4 : vector<8x1xf32> to vector<8x32xf32>
    %6 = arith.subf %0, %5 : vector<8x32xf32>
    %7 = arith.mulf %6, %6 : vector<8x32xf32>
    %cst_2 = arith.constant dense<0.000000e+00> : vector<8xf32>
    %8 = vector.multi_reduction <add>, %7, %cst_2 [1] : vector<8x32xf32> to vector<8xf32>
    %9 = vector.shape_cast %8 : vector<8xf32> to vector<8x1xf32>
    %cst_3 = arith.constant 3.100000e+01 : f32
    %10 = vector.broadcast %cst_3 : f32 to vector<8x1xf32>
    %11 = arith.divf %9, %10 : vector<8x1xf32>
    %c0_4 = arith.constant 0 : index
    %12 = memref.load %arg1[%c0_4] : memref<1xf32, #tpu.memory_space<smem>>
    %cst_5 = arith.constant 9.99999974E-6 : f32
    %13 = vector.broadcast %cst_5 : f32 to vector<8x1xf32>
    %14 = arith.addf %11, %13 : vector<8x1xf32>
    %15 = math.rsqrt %14 : vector<8x1xf32>
    %16 = vector.broadcast %12 : f32 to vector<8x1xf32>
    %17 = arith.mulf %16, %15 : vector<8x1xf32>
    %c0_6 = arith.constant 0 : index
    %18 = memref.load %arg2[%c0_6] : memref<1xf32, #tpu.memory_space<smem>>
    %19 = arith.mulf %4, %17 : vector<8x1xf32>
    %20 = vector.broadcast %18 : f32 to vector<8x1xf32>
    %21 = arith.subf %20, %19 : vector<8x1xf32>
    %22 = vector.broadcast %17 : vector<8x1xf32> to vector<8x32xf32>
    %23 = arith.mulf %0, %22 : vector<8x32xf32>
    %24 = vector.broadcast %21 : vector<8x1xf32> to vector<8x32xf32>
    %25 = arith.addf %23, %24 : vector<8x32xf32>
    %c0_7 = arith.constant 0 : index
    %c0_8 = arith.constant 0 : index
    %26 = vector.load %arg4[%c0_7, %c0_8] : memref<8x32xf32, #tpu.memory_space<vmem>>, vector<8x32xf32>
    tpu.vector_store %arg4[%c0_7, %c0_8], %25 {strides = array<i32>} : memref<8x32xf32, #tpu.memory_space<vmem>>, vector<8x32xf32>,
    return
  }
  func.func @transform_0(%arg0: i32) -> i32 {
    %c0_i32 = arith.constant 0 : i32
    %c0_i32_0 = arith.constant 0 : i32
    return %c0_i32 : i32
  }
  func.func @transform_1(%arg0: i32) -> i32 {
    %c0_i32 = arith.constant 0 : i32
    %c0_i32_0 = arith.constant 0 : i32
    return %c0_i32 : i32
  }
  func.func @transform_2(%arg0: i32) -> (i32, i32) {
    %c0_i32 = arith.constant 0 : i32
    %c0_i32_0 = arith.constant 0 : i32
    return %arg0, %c0_i32 : i32, i32
  }
  func.func @transform_3(%arg0: i32) -> (i32, i32) {
    %c0_i32 = arith.constant 0 : i32
    %c0_i32_0 = arith.constant 0 : i32
    return %arg0, %c0_i32 : i32, i32
  }
}

</mosaic_0001>

<bundles_post_ra>
// kernel: tpu_custom_call.1
= control target key start
LH: loop header
LB: loop body
LE: loop exit
PB: predicated region body
PF: predicated region fallthrough
CT: control target
= control target key end

     0   :  { %s648_s0 = inlined_call_operand.<no memory space> [shape: f32[1], index: 0, kind: input, shape index: {}]   ;;  %s649_s1 = inlined_call_operand.<no memory space> [shape: f32[1], index: 1, kind: input, shape index: {}]   ;;  %s650_s2 = inlined_call_operand.hbm [shape: f32[16,32], index: 2, kind: input, shape index: {}]   ;;  %s651_s3 = inlined_call_operand.hbm [shape: f32[16,32], index: 3, kind: output, shape index: {}]  }
   0x1   :  { %8 = sst [smem:[#allocation2]] %s648_s0 }
   0x2   :  { %9 = sst [smem:[#allocation3]] %s649_s1 }
   0x3   :  { %10 = vsyncpa [#allocation5], 0 }
   0x4   :  { %12 = vsyncpa [#allocation5 + $0x1], 0 }
   0x5   :  { %13 = vsyncpa [#allocation6], 0 }
   0x6   :  { %15 = vsyncpa [#allocation6 + $0x1], 0  ;;  %s484_s16 = smov 0   ;;  %s486_s17 = smov 0  }
   0x7   :  { %s488_s18 = smov 0   ;;  %s490_s19 = smov 0  }
   0x8 LB: > { %s505_s0 = sadd.s32 4294967295, %s454_s19   ;;  %s298_s1 = sadd.s32 4294967294, %s454_s19   ;;  %s454_s19 = sphi %s490_s19, %s666_s19   ;;  %s450_s18 = sphi %s488_s18, %s665_s18   ;;  %s446_s17 = sphi %s486_s17, %s664_s17   ;;  %s442_s16 = sphi %s484_s16, %s663_s16  }
   0x9   : > { %s509_s20 = sadd.s32 1, %s454_s19   ;;  %s70_s21 = sadd.s32 1, %s450_s18 }
   0xa   : > { %s67_s22 = ssub.s32 %s454_s19, %s509_s20  ;;  %p77_p0 = scmp.ne.s32.totalorder %s450_s18, %s446_s17 }
   0xb   : > { %p68_p1 = scmp.eq.s32.totalorder %s67_s22, 0  ;;  %p78_p2 = scmp.eq.s32.totalorder %s454_s19, 0 }
   0xc   : > { %p83_p3 = scmp.ne.s32.totalorder %s446_s17, %s442_s16  ;;  %p84_p4 = scmp.eq.s32.totalorder %s505_s0, 0 }
   0xd   : > { %s521_s23 = scalar_select %p68_p1, %s450_s18, %s70_s21  }
   0xe   : > { %p523_p5 = por %p78_p2, %p77_p0  ;;  %p527_p6 = por %p84_p4, %p83_p3 }
   0xf   : > { %p107_p7 = scmp.eq.s32.totalorder %s505_s0, 1  ;;  %p113_p8 = scmp.eq.s32.totalorder %s298_s1, 1 }
  0x10   : > { %p322_p10 = scmp.lt.s32.totalorder %s454_s19, 2  ;;  %s139_s28 = sand.u32 1, %s450_s18  }
  0x11   : > { %p534_p11 = por %p107_p7, %p77_p0  ;;  %p538_p12 = por %p113_p8, %p83_p3 }
  0x12   : > { %s302_s29 = sshll.u32 %s454_s19, 7  ;;  %s301_s30 = sshll.u32 %s139_s28, 3 }
  0x13   : > { %s655_s26 = scalar_select %p534_p11, 1, 0 }
  0x14   : > { %s656_s27 = scalar_select %p538_p12, 1, 0 }
  0x15   : > { %s547_s6 = scalar_lea.hbm %s650_s2, %s302_s29  ;;  %s143_s7 = scalar_lea.vmem [#allocation4], %s301_s30 }
  0x16   : > { %s150_s8 = sshll.u32 %s143_s7, 4  ;;  %p551_p13 = pnand %p322_p10, %p523_p5  ;;  %s555_s8 = int_to_ptr.vmem [resolvable:$true] %s150_s8 }
  0x17   : > { %s140_s10 = scalar_lea.sflag [#allocation5], %s139_s28  ;;  %s358_s11 = scalar_lea.hbm %s547_s6, 128 }
  0x18   : > { %p359_p2 = scmp.ne.s32.totalorder %s547_s6, %s358_s11  ;;  %p360_p3 = pneg %p551_p13 }
  0x19   : > { %s363_s14 = scalar_lea.hbm %s650_s2, 256  ;;  %p364_p5 = scmp.lt.u32.totalorder %s547_s6, %s650_s2 }
  0x1a   : > { %p361_p4 = pnand %p360_p3, %p359_p2  ;;  %p365_p8 = scmp.lt.u32.totalorder %s363_s14, %s358_s11 }
  0x1b   : > { %p367_p9 = scmp.lt.u32.totalorder %s358_s11, %s547_s6 }
  0x1c   : > { %p362_p7 = pneg %p361_p4  ;;  %p366_p10 = por %p365_p8, %p364_p5 }
  0x1e   : > { %p368_p0 = por %p367_p9, %p366_p10 }
  0x20   : > { %p369_p1 = pnand %p368_p0, %p362_p7 }
  0x22   : > { %372 = shalt.err (!%p369_p1)
}
  0x23   : > { %s373_s21 = scalar_lea.vmem %s555_s8, 128  ;;  %s456_s22 = smov [#allocation4]  }
  0x24   : > { %p374_p2 = scmp.ne.s32.totalorder %s555_s8, %s373_s21  ;;  %s378_s24 = sshll.u32 %s456_s22, 4  ;;  %s379_s24 = int_to_ptr.vmem [resolvable:$false] %s378_s24 }
  0x25   : > { %s380_s28 = scalar_lea.vmem %s379_s24, 256  ;;  %p381_p11 = scmp.lt.s32.totalorder %s555_s8, %s379_s24 }
  0x26   : > { %p376_p4 = pnand %p374_p2, %p360_p3  ;;  %p382_p5 = scmp.lt.s32.totalorder %s380_s28, %s373_s21 }
  0x28   : > { %p377_p12 = pneg %p376_p4  ;;  %p383_p8 = por %p382_p5, %p381_p11 }
  0x2a   : > { %p384_p9 = pnand %p383_p8, %p377_p12 }
  0x2c   : > { %387 = shalt.err (!%p384_p9)
}
  0x2d   : > { %317 = dma.hbm_to_vmem [thread:$0]  (!%p551_p13), %s547_s6, 128, %s555_s8, %s140_s10  }
  0x2e   : > { %p658_p0 = scmp.lt.s32.totalorder %s454_s19, 3  ;;  %p659_p1 = scmp.ge.s32.totalorder %s454_s19, 1 }
  0x30   : > { %p156_p3 = pnand %p659_p1, %p658_p0 }
  0x31   : > { %s589_s29 = sand.u32 (!%p156_p3), 1, %s446_s17  }
  0x32   : > { %159 = sbr.rel (%p156_p3) target bundleno = 388 (0x184), region = 32  ;;  %s304_s30 = sshll.u32 (!%p156_p3), %s589_s29, 3 }
  0x33   : > { %s162_s4 = scalar_lea.sflag (!%p156_p3), [#allocation5], %s589_s29  ;;  %s165_s5 = scalar_lea.vmem (!%p156_p3), [#allocation4], %s304_s30 }
  0x39   : > { %433 = dma.done.wait (%p527_p6), %s162_s4, 128  }
  0x3a   : > { %435 = vsyncadd (%p527_p6), %s162_s4, 4294967168  ;;  %vm189_vm0 = vcmask 261120   ;;  %v188_v0 = vld [vmem:[%s165_s5] sm:$0xff]  ;;  %s202_s6 = sld [smem:[#allocation2]]  ;;  %s307_s7 = sshll.u32 %s505_s0, 7 }
  0x3b   : > { %v190_v1 = vsel %vm189_vm0, %v188_v0, 0.0  ;;  %s207_s25 = sld [smem:[#allocation3]]  ;;  %s187_s8 = scalar_lea.vmem [#allocation7], %s304_s30 }
  0x3c   : > { %191 = vadd.xlane.f32.xlu0 %v190_v1  ;;  %s228_s9 = sshll.u32 %s187_s8, 4  ;;  %s603_s12 = scalar_lea.hbm %s651_s3, %s307_s7  ;;  %s605_s9 = int_to_ptr.vmem [resolvable:$true] %s228_s9 }
  0x3d   : > { %s215_s13 = scalar_lea.sflag [#allocation6], %s589_s29  ;;  %s388_s14 = scalar_lea.vmem %s605_s9, 128 }
  0x3e   : > { %p389_p6 = scmp.ne.s32.totalorder %s605_s9, %s388_s14  ;;  %p660_p11 = scmp.ne.s32.totalorder %s655_s26, 0 }
  0x3f   : > { %s457_s0 = smov [#allocation7]  }
  0x40   : > { %v205_v10 = vstv %s202_s6  ;;  %p390_p12 = pnand %p389_p6, %p660_p11  ;;  %s392_s15 = sshll.u32 %s457_s0, 4  ;;  %s393_s15 = int_to_ptr.vmem [resolvable:$false] %s392_s15 }
  0x41   : > { %v209_v13 = vstv %s207_s25  ;;  %s394_s1 = scalar_lea.vmem %s393_s15, 256  ;;  %p395_p7 = scmp.lt.s32.totalorder %s605_s9, %s393_s15 }
  0x42   : > { %p391_p13 = pneg %p390_p12  ;;  %p396_p10 = scmp.lt.s32.totalorder %s394_s1, %s388_s14 }
  0x44   : > { %p397_p2 = por %p396_p10, %p395_p7 }
  0x46   : > { %p398_p4 = pnand %p397_p2, %p391_p13 }
  0xc9   : > { %v192_v2 = vpop.xlane.xlu0 %191 }
  0xca   : > { %v194_v3 = vmul.f32 0.03125, %v192_v2 }
  0xcc   : > { %v195_v4 = vsub.f32 %v188_v0, %v194_v3 }
  0xce   : > { %v196_v5 = vmul.f32 %v195_v4, %v195_v4 }
  0xd0   : > { %v197_v6 = vsel %vm189_vm0, %v196_v5, 0.0 }
  0xd1   : > { %198 = vadd.xlane.f32.xlu0 %v197_v6 }
 0x15e   : > { %v199_v7 = vpop.xlane.xlu0 %198 }
 0x15f   : > { %v201_v8 = vmul.f32 0.032258064, %v199_v7 }
 0x161   : > { %v203_v9 = vadd.f32 1e-05, %v201_v8 }
 0x163   : > { %356 = vrsqrt.f32 %v203_v9 }
 0x16d   : > { %v357_v11 = vpop.eup %356 }
 0x16e   : > { %v206_v12 = vmul.f32 %v357_v11, %v205_v10 }
 0x170   : > { %v208_v14 = vmul.f32 %v206_v12, %v194_v3  ;;  %v211_v15 = vmul.f32 %v206_v12, %v188_v0 }
 0x172   : > { %v210_v16 = vsub.f32 %v209_v13, %v208_v14 }
 0x174   : > { %v212_v17 = vadd.f32 %v211_v15, %v210_v16 }
 0x176   : > { %213 = vst.msk [vmem:[%s187_s8] sm:$0xff] %vm189_vm0, %v212_v17 }
 0x177   : > { %401 = shalt.err (!%p398_p4)
}
 0x178   : > { %s402_s21 = scalar_lea.hbm %s603_s12, 128  ;;  %s406_s28 = scalar_lea.hbm %s651_s3, 256 }
 0x179   : > { %p403_p5 = scmp.ne.s32.totalorder %s603_s12, %s402_s21  ;;  %p407_p0 = scmp.lt.u32.totalorder %s603_s12, %s651_s3 }
 0x17a   : > { %p408_p1 = scmp.lt.u32.totalorder %s406_s28, %s402_s21  ;;  %p410_p6 = scmp.lt.u32.totalorder %s402_s21, %s603_s12 }
 0x17b   : > { %p404_p8 = pnand %p403_p5, %p660_p11 }
 0x17c   : > { %p409_p3 = por %p408_p1, %p407_p0 }
 0x17d   : > { %p405_p9 = pneg %p404_p8 }
 0x17e   : > { %p411_p12 = por %p410_p6, %p409_p3 }
 0x180   : > { %p412_p13 = pnand %p411_p12, %p405_p9 }
 0x182   : > { %415 = shalt.err (!%p412_p13)
}
 0x183   : > { %312 = dma.vmem_to_hbm [thread:$0]  (%p660_p11), %s605_s9, 128, %s603_s12, %s215_s13  }
 0x184 PF: > { %s240_s4 = sand.u32 1, %s442_s16   ;;  %p661_p7 = scmp.ne.s32.totalorder %s656_s27, 0 }
 0x185   : > { %p662_p10 = scmp.ge.s32.totalorder %s454_s19, 2  ;;  %s241_s5 = scalar_lea.sflag [#allocation6], %s240_s4 }
 0x187   : > { %p319_p2 = pnand %p662_p10, %p661_p7 }
 0x189   : > { %437 = dma.done.wait (!%p319_p2), %s241_s5, 128  }
 0x18a   : > { %439 = vsyncadd (!%p319_p2), %s241_s5, 4294967168  ;;  %p18_p4 = scmp.ge.s32.totalorder %s509_s20, 4   ;;  %s663_s16 = smov %s446_s17 }
 0x18b   : > { %s664_s17 = smov %s450_s18  ;;  %s665_s18 = smov %s521_s23 }
 0x18c   : > { %s666_s19 = smov %s509_s20  ;;  %20 = sbr.rel (!%p18_p4) target bundleno = 8 (0x8), region = 77 }
 0x193   :  { %246 = vsyncpa [#allocation5], 1 }
 0x194   :  { %248 = vsyncpa [#allocation5 + $0x1], 1 }
 0x195   :  { %249 = vsyncpa [#allocation6], 1 }
 0x196   :  { %251 = vsyncpa [#allocation6 + $0x1], 1 }

</bundles_post_ra>
